<compile_context>
chip_gen: v6e
topology: v6e:2x2x1
jax: 0.10.0
libtpu: 0.0.40
codegen_flags: <defaults>
</compile_context>

<pallas_src>
import jax
import jax.numpy as jnp
from jax.experimental import pallas as pl
from jax.experimental.pallas import tpu as pltpu


def _round_up(n, m):
    return ((n + m - 1) // m) * m


def _vmem_budget_bytes():
    """~75% of physical per-core VMEM (headroom for compiler scratch/sems)."""
    cap = None
    try:
        cap = getattr(pltpu.get_tpu_info(), "vmem_capacity_bytes", None)
    except Exception:
        cap = None
    if not cap:
        cap = 64 * 1024 * 1024          # conservative fallback (v7x physical)
    return (int(cap) * 3) // 4


# ----------------------------------------------------------------------------
# Kernel: one batch tile, full feature dims.
#   x_ref : (TB, K)  f32 (cast to bf16 in-kernel)
#   w1_ref: (K, Hp)  bf16     b1_ref: (1, Hp) f32
#   w2_ref: (Hp, E)  bf16     b2_ref: (1, E)  f32
#   o_ref : (TB, E)  f32
# ----------------------------------------------------------------------------
def _encoder_kernel(x_ref, w1_ref, b1_ref, w2_ref, b2_ref, o_ref):
    # layer 1: Linear (BN affine + bias pre-folded into w1/b1) -> ReLU
    x = x_ref[...].astype(w1_ref.dtype)
    h = jnp.dot(x, w1_ref[...], preferred_element_type=jnp.float32)
    h = jnp.maximum(h + b1_ref[...], 0.0)
    # Dropout(0.2): identity in eval mode

    # layer 2: Linear (BN affine + bias pre-folded into w2/b2) -> ReLU
    y = jnp.dot(h.astype(w2_ref.dtype), w2_ref[...],
                preferred_element_type=jnp.float32)
    y = jnp.maximum(y + b2_ref[...], 0.0)

    o_ref[...] = y.astype(o_ref.dtype)


# ----------------------------------------------------------------------------
# One-time parameter preparation: fold eval-mode BN + bias, pad intermediate
# dim to a lane multiple, cast weights to bf16.  Call once, reuse per forward.
# ----------------------------------------------------------------------------
def prepare_params(params, compute_dtype=jnp.bfloat16):
    w1, b1, s1, t1 = params["w1"], params["b1"], params["s1"], params["t1"]
    w2, b2, s2, t2 = params["w2"], params["b2"], params["s2"], params["t2"]
    K, H = w1.shape
    E = w2.shape[1]
    Hp = _round_up(H, 128)              # lane-dense intermediate (never hits HBM)

    w1f = (w1 * s1).astype(compute_dtype)
    b1f = (b1 * s1 + t1).astype(jnp.float32)
    w2f = (w2 * s2).astype(compute_dtype)
    b2f = (b2 * s2 + t2).astype(jnp.float32)

    w1p = jnp.zeros((K, Hp), compute_dtype).at[:, :H].set(w1f)
    b1p = jnp.zeros((1, Hp), jnp.float32).at[:, :H].set(b1f)   # pad cols -> relu(0)=0
    w2p = jnp.zeros((Hp, E), compute_dtype).at[:H, :].set(w2f)  # pad rows contribute 0

    return dict(w1=w1p, b1=b1p, w2=w2p, b2=b2f)


# ----------------------------------------------------------------------------
# Forward: stream x over the batch, keep (prepared) weights resident in VMEM.
# ----------------------------------------------------------------------------
def encoder_forward(x, prepared, *, max_block_b=2048):
    """x: [B, input_size] float32.  prepared: dict from prepare_params."""
    B, K = x.shape
    w1, b1, w2, b2 = prepared["w1"], prepared["b1"], prepared["w2"], prepared["b2"]
    Hp = w1.shape[1]
    E = w2.shape[1]

    vmem_budget = _vmem_budget_bytes()

    # ---- pick batch tile from the double-buffered VMEM footprint
    resident = (w1.size * w1.dtype.itemsize + w2.size * w2.dtype.itemsize
                + b1.size * 4 + b2.size * 4)
    per_row = 2 * (K * x.dtype.itemsize + E * 4)   # 2-deep x-in + out buffers
    avail = max(vmem_budget - resident, 8 * per_row)
    tb = min(max_block_b, avail // per_row)
    tb = max(8, (tb // 8) * 8)
    if B > 8:
        # at least 2 grid steps so "parallel" can shard across v7x's 2 TCs
        tb = min(tb, _round_up(pl.cdiv(B, 2), 8))
    tb = max(8, min(tb, _round_up(B, 8)))

    grid = (pl.cdiv(B, tb),)            # ragged last block: OOB rows dropped

    cost = pl.CostEstimate(
        flops=2 * B * K * Hp + 2 * B * Hp * E,
        transcendentals=0,
        bytes_accessed=(B * K * x.dtype.itemsize
                        + w1.size * w1.dtype.itemsize
                        + w2.size * w2.dtype.itemsize
                        + b1.size * 4 + b2.size * 4
                        + B * E * 4),
    )

    out = pl.pallas_call(
        _encoder_kernel,
        out_shape=jax.ShapeDtypeStruct((B, E), jnp.float32),
        grid_spec=pl.GridSpec(
            grid=grid,
            in_specs=[
                pl.BlockSpec((tb, K), lambda i: (i, 0)),   # x: streamed per tile
                pl.BlockSpec((K, Hp), lambda i: (0, 0)),   # w1: resident
                pl.BlockSpec((1, Hp), lambda i: (0, 0)),   # b1: resident
                pl.BlockSpec((Hp, E), lambda i: (0, 0)),   # w2: resident
                pl.BlockSpec((1, E),  lambda i: (0, 0)),   # b2: resident
            ],
            out_specs=pl.BlockSpec((tb, E), lambda i: (i, 0)),
        ),
        compiler_params=pltpu.CompilerParams(
            dimension_semantics=("parallel",),
            vmem_limit_bytes=int(vmem_budget),
        ),
        cost_estimate=cost,
    )(x, w1, b1, w2, b2)

    return out


# ----------------------------------------------------------------------------
# Parameter init (mimics nn.Linear default init + eval-mode BatchNorm stats).
# ----------------------------------------------------------------------------
def init_params(key, input_size, intermediate_size, encoding_size,
                is_enable_bath_norm):
    k = jax.random.split(key, 8)

    def linear(kw, kb, fan_in, fan_out):
        bound = 1.0 / jnp.sqrt(fan_in)
        w = jax.random.uniform(kw, (fan_in, fan_out), jnp.float32, -bound, bound)
        b = jax.random.uniform(kb, (1, fan_out), jnp.float32, -bound, bound)
        return w, b

    w1, b1 = linear(k[0], k[1], input_size, intermediate_size)
    w2, b2 = linear(k[2], k[3], intermediate_size, encoding_size)

    if is_enable_bath_norm:
        # Eval-mode BatchNorm1d as per-feature scale/shift:
        #   y = gamma * (x - mean) / sqrt(var + eps) + beta
        eps = 1e-5

        def bn_fold(kg, kb, n):
            gamma = 1.0 + 0.1 * jax.random.normal(kg, (1, n), jnp.float32)
            beta = 0.1 * jax.random.normal(kb, (1, n), jnp.float32)
            mean = 0.05 * jnp.arange(n, dtype=jnp.float32).reshape(1, n)
            var = jnp.ones((1, n), jnp.float32) * 1.5
            inv = gamma / jnp.sqrt(var + eps)
            return inv, beta - mean * inv

        s1, t1 = bn_fold(k[4], k[5], intermediate_size)
        s2, t2 = bn_fold(k[6], k[7], encoding_size)
    else:
        s1 = jnp.ones((1, intermediate_size), jnp.float32)
        t1 = jnp.zeros((1, intermediate_size), jnp.float32)
        s2 = jnp.ones((1, encoding_size), jnp.float32)
        t2 = jnp.zeros((1, encoding_size), jnp.float32)

    return dict(w1=w1, b1=b1, s1=s1, t1=t1, w2=w2, b2=b2, s2=s2, t2=t2)


def encoder_reference(x, p, compute_dtype=jnp.bfloat16):
    """Pure-JAX reference emulating the kernel's bf16 matmul inputs."""
    cast = lambda a: a.astype(compute_dtype).astype(jnp.float32)
    w1f = p["w1"] * p["s1"]
    b1f = p["b1"] * p["s1"] + p["t1"]
    w2f = p["w2"] * p["s2"]
    b2f = p["b2"] * p["s2"] + p["t2"]
    h = jnp.maximum(cast(x) @ cast(w1f) + b1f, 0.0)
    y = jnp.maximum(cast(h) @ cast(w2f) + b2f, 0.0)
    return y


if __name__ == "__main__":
    key = jax.random.PRNGKey(0)
    kx, kp = jax.random.split(key)

    batch = 8
    input_size = 32
    intermediate_size = 64
    encoding_size = 16

    x = jax.random.normal(kx, (batch, input_size), jnp.float32)

    for is_enable_bath_norm in (True, False):
        params = init_params(kp, input_size, intermediate_size, encoding_size,
                             is_enable_bath_norm)
        prepared = prepare_params(params)       # one-time fold/pad/cast

        out = encoder_forward(x, prepared)
        out = jax.block_until_ready(out)

        ref = encoder_reference(x, params)
        assert out.shape == (batch, encoding_size)
        assert jnp.allclose(out, ref, atol=1e-2, rtol=1e-2), "mismatch vs reference"

    print("KERNEL_OK")
</pallas_src>

<mosaic_0001>
module attributes {stable_mosaic.version = 11 : i64} {
  func.func @_encoder_kernel(%arg0: i32, %arg1: memref<8x32xf32, #tpu.memory_space<vmem>>, %arg2: memref<32x128xbf16, #tpu.memory_space<vmem>>, %arg3: memref<1x128xf32, #tpu.memory_space<vmem>>, %arg4: memref<128x16xbf16, #tpu.memory_space<vmem>>, %arg5: memref<1x16xf32, #tpu.memory_space<vmem>>, %arg6: memref<8x16xf32, #tpu.memory_space<vmem>>) attributes {dimension_semantics = [#tpu.dimension_semantics<parallel>], iteration_bounds = array<i64: 1>, scalar_prefetch = 0 : i64, scratch_operands = 0 : i64, tpu.core_type = #tpu.core_type<tc>, window_params = [{transform_indices = @transform_0, window_bounds = array<i64: 8, 32>}, {pipeline_mode = #tpu.pipeline_mode<synchronous>, transform_indices = @transform_1, window_bounds = array<i64: 32, 128>}, {pipeline_mode = #tpu.pipeline_mode<synchronous>, transform_indices = @transform_2, window_bounds = array<i64: 1, 128>}, {pipeline_mode = #tpu.pipeline_mode<synchronous>, transform_indices = @transform_3, window_bounds = array<i64: 128, 16>}, {pipeline_mode = #tpu.pipeline_mode<synchronous>, transform_indices = @transform_4, window_bounds = array<i64: 1, 16>}, {transform_indices = @transform_5, window_bounds = array<i64: 8, 16>}]} {
    %c0 = arith.constant 0 : index
    %c0_0 = arith.constant 0 : index
    %0 = vector.load %arg1[%c0, %c0_0] : memref<8x32xf32, #tpu.memory_space<vmem>>, vector<8x32xf32>
    %1 = arith.truncf %0 : vector<8x32xf32> to vector<8x32xbf16>
    %c0_1 = arith.constant 0 : index
    %c0_2 = arith.constant 0 : index
    %2 = vector.load %arg2[%c0_1, %c0_2] : memref<32x128xbf16, #tpu.memory_space<vmem>>, vector<32x128xbf16>
    %cst = arith.constant dense<0.000000e+00> : vector<8x128xf32>
    %3 = tpu.matmul %1, %2, %cst {dimension_numbers = #tpu.dot_dimension_numbers<[1], [0], [0], [1], [0, 0, 1, 1], [], []>} : vector<8x32xbf16>, vector<32x128xbf16>, vector<8x128xf32> -> vector<8x128xf32>
    %c0_3 = arith.constant 0 : index
    %c0_4 = arith.constant 0 : index
    %4 = vector.load %arg3[%c0_3, %c0_4] : memref<1x128xf32, #tpu.memory_space<vmem>>, vector<1x128xf32>
    %5 = vector.broadcast %4 : vector<1x128xf32> to vector<8x128xf32>
    %6 = arith.addf %3, %5 : vector<8x128xf32>
    %cst_5 = arith.constant 0.000000e+00 : f32
    %7 = vector.broadcast %cst_5 : f32 to vector<8x128xf32>
    %8 = arith.maximumf %6, %7 : vector<8x128xf32>
    %9 = arith.truncf %8 : vector<8x128xf32> to vector<8x128xbf16>
    %c0_6 = arith.constant 0 : index
    %c0_7 = arith.constant 0 : index
    %10 = vector.load %arg4[%c0_6, %c0_7] : memref<128x16xbf16, #tpu.memory_space<vmem>>, vector<128x16xbf16>
    %cst_8 = arith.constant dense<0.000000e+00> : vector<8x16xf32>
    %11 = tpu.matmul %9, %10, %cst_8 {dimension_numbers = #tpu.dot_dimension_numbers<[1], [0], [0], [1], [0, 0, 1, 1], [], []>} : vector<8x128xbf16>, vector<128x16xbf16>, vector<8x16xf32> -> vector<8x16xf32>
    %c0_9 = arith.constant 0 : index
    %c0_10 = arith.constant 0 : index
    %12 = vector.load %arg5[%c0_9, %c0_10] : memref<1x16xf32, #tpu.memory_space<vmem>>, vector<1x16xf32>
    %13 = vector.broadcast %12 : vector<1x16xf32> to vector<8x16xf32>
    %14 = arith.addf %11, %13 : vector<8x16xf32>
    %cst_11 = arith.constant 0.000000e+00 : f32
    %15 = vector.broadcast %cst_11 : f32 to vector<8x16xf32>
    %16 = arith.maximumf %14, %15 : vector<8x16xf32>
    %c0_12 = arith.constant 0 : index
    %c0_13 = arith.constant 0 : index
    %17 = vector.load %arg6[%c0_12, %c0_13] : memref<8x16xf32, #tpu.memory_space<vmem>>, vector<8x16xf32>
    tpu.vector_store %arg6[%c0_12, %c0_13], %16 {strides = array<i32>} : memref<8x16xf32, #tpu.memory_space<vmem>>, vector<8x16xf32>,
    return
  }
  func.func @transform_0(%arg0: i32) -> (i32, i32) {
    %c0_i32 = arith.constant 0 : i32
    %c0_i32_0 = arith.constant 0 : i32
    return %arg0, %c0_i32 : i32, i32
  }
  func.func @transform_1(%arg0: i32) -> (i32, i32) {
    %c0_i32 = arith.constant 0 : i32
    %c0_i32_0 = arith.constant 0 : i32
    %c0_i32_1 = arith.constant 0 : i32
    return %c0_i32, %c0_i32_0 : i32, i32
  }
  func.func @transform_2(%arg0: i32) -> (i32, i32) {
    %c0_i32 = arith.constant 0 : i32
    %c0_i32_0 = arith.constant 0 : i32
    %c0_i32_1 = arith.constant 0 : i32
    return %c0_i32, %c0_i32_0 : i32, i32
  }
  func.func @transform_3(%arg0: i32) -> (i32, i32) {
    %c0_i32 = arith.constant 0 : i32
    %c0_i32_0 = arith.constant 0 : i32
    %c0_i32_1 = arith.constant 0 : i32
    return %c0_i32, %c0_i32_0 : i32, i32
  }
  func.func @transform_4(%arg0: i32) -> (i32, i32) {
    %c0_i32 = arith.constant 0 : i32
    %c0_i32_0 = arith.constant 0 : i32
    %c0_i32_1 = arith.constant 0 : i32
    return %c0_i32, %c0_i32_0 : i32, i32
  }
  func.func @transform_5(%arg0: i32) -> (i32, i32) {
    %c0_i32 = arith.constant 0 : i32
    %c0_i32_0 = arith.constant 0 : i32
    return %arg0, %c0_i32 : i32, i32
  }
}

</mosaic_0001>

<bundles_post_ra>
// kernel: tpu_custom_call.1
= control target key start
LH: loop header
LB: loop body
LE: loop exit
PB: predicated region body
PF: predicated region fallthrough
CT: control target
= control target key end

     0   :  { %v309_v1 = vmov 0.0   ;;  %vm310_vm0 = vmmov 0   ;;  %vm47_vm1 = vcmask 261120   ;;  %s384_s0 = inlined_call_operand.vmem [shape: f32[8,32], index: 0, kind: input, shape index: {}]   ;;  %s385_s1 = inlined_call_operand.vmem [shape: bf16[32,128], index: 1, kind: input, shape index: {}]   ;;  %s386_s2 = inlined_call_operand.vmem [shape: f32[1,128], index: 2, kind: input, shape index: {}]   ;;  %s387_s3 = inlined_call_operand.vmem [shape: bf16[128,16], index: 3, kind: input, shape index: {}]   ;;  %s388_s4 = inlined_call_operand.vmem [shape: f32[1,16], index: 4, kind: input, shape index: {}]   ;;  %s389_s5 = inlined_call_operand.hbm [shape: f32[8,16], index: 5, kind: output, shape index: {}]  }
   0x1   :  { %v277_v0 = vld [vmem:[%s385_s1 + $0x8] sm:$0xff]   ;;  %246 = vmatprep.subr.bf16.mxu0 %v309_v1  ;;  %v278_v2 = vld [vmem:[%s385_s1] sm:$0xff]   ;;  %254 = vmatprep.subr.bf16.mxu1 %v309_v1  ;;  %v279_v4 = vld [vmem:[%s387_s3 + $0x38] sm:$0xff]  }
   0x2   :  { %247 = vmatpush3.bf16.msra.mxu0 %v277_v0  ;;  %250 = vmatprep.mubr.msk.bf16.mxu0 %vm310_vm0, %v309_v1  ;;  %v22_v3 = vld [vmem:[%s384_s0] sm:$0xff]  ;;  %v280_v6 = vld [vmem:[%s387_s3 + $0x30] sm:$0xff]   ;;  %v281_v7 = vld [vmem:[%s387_s3 + $0x28] sm:$0xff]  }
   0x3   :  { %248 = vmatprep.subr.bf16.mxu0 %v309_v1  ;;  %270 = vmatprep.mubr.msk.bf16.mxu1 %vm310_vm0, %v309_v1  ;;  %v23_v5 = vpack.c.bf16 %v22_v3, %v22_v3 }
   0x4   :  { %255 = vmatpush3.bf16.msra.mxu1 %v279_v4 }
   0x5   :  { %256 = vmatprep.subr.bf16.mxu1 %v309_v1 }
   0x6   :  { %249 = vmatpush3.bf16.msra.mxu0 %v278_v2 }
   0x8   :  { %257 = vmatpush3.bf16.msra.mxu1 %v280_v6 }
   0x9   :  { %251 = vmatmul.mubr.msk.bf16.vlgmr.msra.gmra.mxu0 %vm47_vm1, %v23_v5  ;;  %258 = vmatprep.subr.bf16.mxu1 %v309_v1 }
   0xa   :  { %10 = vsyncpa [#allocation3], 0  ;;  %v282_v8 = vld [vmem:[%s387_s3 + $0x20] sm:$0xff]   ;;  %v283_v9 = vld [vmem:[%s387_s3 + $0x18] sm:$0xff]   ;;  %s311_s17 = smov [#allocation2]   ;;  %vm205_vm2 = vcmask 130048  }
   0xb   :  { %v284_v10 = vld [vmem:[%s387_s3 + $0x10] sm:$0xff]   ;;  %v285_v11 = vld [vmem:[%s387_s3 + $0x8] sm:$0xff]   ;;  %v286_v12 = vld [vmem:[%s387_s3] sm:$0xff]   ;;  %s213_s3 = sshll.u32 %s311_s17, 4  ;;  %s214_s3 = int_to_ptr.vmem [resolvable:$true] %s213_s3 }
   0xc   :  { %259 = vmatpush3.bf16.msra.mxu1 %v281_v7  ;;  %v221_v13 = vld [vmem:[%s386_s2] ss:$0 sm:$0xff]  ;;  %s287_s2 = scalar_lea.vmem %s214_s3, 128  ;;  %p292_p1 = scmp.lt.s32.totalorder %s214_s3, %s214_s3 }
   0xd   :  { %260 = vmatprep.subr.bf16.mxu1 %v309_v1  ;;  %v225_v21 = vld [vmem:[%s388_s4] ss:$0 sm:$0xff]  ;;  %p288_p0 = scmp.ne.s32.totalorder %s214_s3, %s287_s2  ;;  %p293_p2 = scmp.lt.s32.totalorder %s287_s2, %s287_s2 }
   0xf   :  { %p294_p3 = por %p293_p2, %p292_p1 }
  0x10   :  { %261 = vmatpush3.bf16.msra.mxu1 %v282_v8 }
  0x11   :  { %262 = vmatprep.subr.bf16.mxu1 %v309_v1  ;;  %p295_p4 = pnand %p294_p3, %p288_p0 }
  0x14   :  { %263 = vmatpush3.bf16.msra.mxu1 %v283_v9 }
  0x15   :  { %264 = vmatprep.subr.bf16.mxu1 %v309_v1 }
  0x18   :  { %265 = vmatpush3.bf16.msra.mxu1 %v284_v10 }
  0x19   :  { %266 = vmatprep.subr.bf16.mxu1 %v309_v1 }
  0x1c   :  { %267 = vmatpush3.bf16.msra.mxu1 %v285_v11 }
  0x1d   :  { %268 = vmatprep.subr.bf16.mxu1 %v309_v1 }
  0x20   :  { %269 = vmatpush3.bf16.msra.mxu1 %v286_v12 }
  0xc9   :  { %v85_v14 = vpop.f32.mrf.mxu0 }
  0xca   :  { %v86_v15 = vadd.f32 %v221_v13, %v85_v14 }
  0xcb   :  { %v252_v16 = vpop.f32.mrf.mxu0 }
  0xcc   :  { %v91_v17 = vmax.f32 %v86_v15, 0.0 }
  0xcd   :  { %v88_v18 = vpop.f32.mrf.mxu0 }
  0xce   :  { %v92_v19 = vpack.c.bf16 %v91_v17, %v91_v17 }
  0xcf   :  { %v253_v20 = vpop.f32.mrf.mxu0 }
  0xd0   :  { %271 = vmatmul.mubr.bf16.vlgmr.msra.gmra.mxu1 %v92_v19 }
 0x190   :  { %v198_v22 = vpop.f32.mrf.mxu1 }
 0x191   :  { %v199_v23 = vadd.f32 %v225_v21, %v198_v22 }
 0x192   :  { %v272_v24 = vpop.f32.mrf.mxu1 }
 0x193   :  { %v204_v25 = vmax.f32 %v199_v23, 0.0 }
 0x194   :  { %v201_v26 = vpop.f32.mrf.mxu1 }
 0x195   :  { %206 = vst.msk [vmem:[#allocation2] sm:$0xff] %vm205_vm2, %v204_v25 }
 0x196   :  { %v273_v27 = vpop.f32.mrf.mxu1 }
 0x197   :  { %298 = shalt.err (!%p295_p4)
}
 0x198   :  { %216 = dma.vmem_to_hbm [thread:$0]  %s214_s3, 128, %s389_s5, [#allocation3]  }
 0x199   :  { %307 = dma.done.wait [#allocation3], 128  }
 0x19a   :  { %308 = vsyncadd [#allocation3], 4294967168 }
 0x19b   :  { %220 = vsyncpa [#allocation3], 1 }

</bundles_post_ra>
